<compile_context>
chip_gen: v5e
topology: v5e:2x2
jax: 0.10.0
libtpu: 0.0.40
codegen_flags: <defaults>
</compile_context>

<pallas_src>
import jax
import jax.numpy as jnp
import numpy as np
from jax.experimental import pallas as pl
from jax.experimental.pallas import tpu as pltpu

# ----------------------- module hyper-parameters -----------------------------
ENCODER_INPUT_LENGTH = 8                     # seq_len (S)
N_FEATURES = 4                               # initial channels (C)
VECTOR_SIZE = 32                             # per-token vector size (= vec*ch)
VEC_SIZE = VECTOR_SIZE // N_FEATURES         # initial conv spatial length (8)
N_CONV_LAYERS = 2
SRC_PAD_IDX = 1
BOS_IDX = 2
EOS_IDX = 3

SEQ_LEN = ENCODER_INPUT_LENGTH
CHANNELS = N_FEATURES
ROW = SEQ_LEN * VECTOR_SIZE                  # 256 lanes per batch row

_ACTIVE_IDX = tuple(float(i) for i in (SRC_PAD_IDX, BOS_IDX, EOS_IDX) if i)
# Base-64 packing of the three equality indicators.  Every packed per-element
# value is a power of two (each element equals at most one of pad/bos/eos), so
# the packed operands are exact even in bf16; the MXU accumulates in f32 and
# all per-token sums stay < 2^24, so the segmented-sum matmul is exact.
_PACK_BASE = float(1 << VECTOR_SIZE.bit_length())        # 64 > VECTOR_SIZE
if _ACTIVE_IDX:
    assert VECTOR_SIZE * _PACK_BASE ** (len(_ACTIVE_IDX) - 1) < 2.0 ** 24


# ------------------------------ Pallas kernel --------------------------------
def conv1d_preencoder_kernel(x_ref, seg_ref, *rest):
    """rest = (*w_refs, out_ref); each w_ref is a folded (ROW, 2*ROW) matrix."""
    w_refs, out_ref = rest[:-1], rest[-1]
    x = x_ref[...]                                        # (TB, ROW) f32
    cdt = seg_ref.dtype                                   # MXU compute dtype

    # ---- conv/pool stack.  Matmul inputs in the compute dtype (bf16 by
    # default -> single-pass MXU on v5e/v6e/v7x); accumulation stays f32.
    # The mask is applied once at the end (exact: 0/1 per token, and each
    # folded matrix is token-block-diagonal with no bias).
    h = x
    for w_ref in w_refs:
        y = jnp.dot(h.astype(w_ref.dtype), w_ref[...],
                    preferred_element_type=jnp.float32)   # (TB, 2*ROW) f32
        # MaxPool1d(2): even/odd l_out live in the two 128-aligned halves.
        h = jnp.maximum(y[:, :ROW], y[:, ROW:])           # f32

    # ---- get_masks(): a token is masked out iff ALL VECTOR_SIZE lanes == idx.
    if _ACTIVE_IDX:
        # Pack the per-element equality indicators base-64 (exact: one-hot per
        # element, values are powers of two), then one segmented-sum matmul
        # gives per-token counts already broadcast over each 32-lane chunk.
        v = None
        scale = 1.0
        for idx in _ACTIVE_IDX:
            term = (x == idx).astype(jnp.float32) * scale
            v = term if v is None else v + term
            scale *= _PACK_BASE
        s = jnp.dot(v.astype(cdt), seg_ref[...],
                    preferred_element_type=jnp.float32)   # exact integers
        # s == VECTOR_SIZE * base**k  <=>  all 32 lanes equal the k-th idx
        # (unique because base > VECTOR_SIZE and the counts sum to <= 32).
        masked = None
        scale = 1.0
        for _ in _ACTIVE_IDX:
            hit = s == (float(VECTOR_SIZE) * scale)
            masked = hit if masked is None else (masked | hit)
            scale *= _PACK_BASE
        mask = 1.0 - masked.astype(jnp.float32)
    else:
        mask = jnp.ones_like(x)

    out_ref[...] = (h * mask).astype(out_ref.dtype)


# --------------------- host-side (numpy) weight folding ----------------------
def _fold_conv_pool_layer(w, l_in, n_tokens, dtype):
    """Fold Conv1d(k=3, 'same', no bias) + MaxPool1d(2) into one matrix of
    shape (n_tokens*l_in*C_in, 2*n_tokens*(l_in//2)*C_out) acting on rows that
    pack `n_tokens` tokens, each a flat (l, c) row-major 32-lane vector.

    Output columns: [all tokens, even l_out | all tokens, odd l_out], each in
    per-token (p, o) row-major order, so MaxPool1d(2) == jnp.maximum(first
    half, second half) and the pooled result already has the layout the next
    layer (and the final output reshape) expects.  Pure numpy: static given
    the conv weights, nothing runs on device per call."""
    w = np.asarray(w, dtype=np.float32)
    c_out, c_in, k = (int(d) for d in w.shape)
    l_pool = l_in // 2
    rows, hcols = l_in * c_in, l_pool * c_out
    l = np.arange(l_in)[:, None, None, None]
    c = np.arange(c_in)[None, :, None, None]
    p = np.arange(l_pool)[None, None, :, None]
    o = np.arange(c_out)[None, None, None, :]
    ar = np.arange(n_tokens)
    halves = []
    for parity in (0, 1):
        t = l - (2 * p + parity) + 1                      # conv tap index
        valid = (t >= 0) & (t < k)
        w_tok = w[o, c, np.clip(t, 0, k - 1)] * valid     # (l_in,c_in,l_pool,c_out)
        w_tok = w_tok.reshape(rows, hcols)                # per-token (32, 32)
        # Block-diagonal over the tokens packed along the 256-lane row.
        bd = np.zeros((n_tokens, rows, n_tokens, hcols), dtype=np.float32)
        bd[ar, :, ar, :] = w_tok
        halves.append(bd.reshape(n_tokens * rows, n_tokens * hcols))
    return np.concatenate(halves, axis=1).astype(dtype)


def _fold_weights(weights, dtype):
    folded, l_in = [], VEC_SIZE
    for w in weights:
        folded.append(_fold_conv_pool_layer(jax.device_get(w), l_in, SEQ_LEN, dtype))
        l_in //= 2
    return folded


# 0/1 matrix that sums (and re-broadcasts) over each token's 32-lane chunk.
_LANE = np.arange(ROW)
_SEG_F32 = ((_LANE[:, None] // VECTOR_SIZE) ==
            (_LANE[None, :] // VECTOR_SIZE)).astype(np.float32)


# ----------------------------- block-row selection ----------------------------
_MAX_BLOCK_ROWS = 2048      # 2048x256 f32 block = 2 MiB; whole pipeline <12 MiB VMEM


def _round_up(x, m):
    return -(-x // m) * m


def _tensorcores_per_chip():
    """Best-effort TC count per chip (perf-only heuristic; never affects
    correctness).  v5e/v6e (and v2/v3) expose 1 TC; v7x / megacore expose 2."""
    try:
        kind = jax.devices()[0].device_kind.lower()
    except Exception:
        return 1
    single = any(tag in kind for tag in ("lite", "v5e", "v6e", "v6 lite", "v2", "v3"))
    return 1 if single else 2


def _pick_block_rows(batch):
    """Single grid step whenever it fits (amortizes the ~0.35us/step overhead
    on 1-TC chips and avoids partial MXU M-tiles); otherwise big 8-aligned
    blocks capped at 2048 rows.  On 2-TC chips use an even number of balanced
    grid steps so dimension_semantics=("parallel",) keeps both cores busy."""
    cores = _tensorcores_per_chip()
    steps = pl.cdiv(batch, _MAX_BLOCK_ROWS)
    if cores >= 2:
        steps = _round_up(max(steps, 2), 2)
    if steps <= 1 or batch < 8 * steps:
        return batch
    return min(_round_up(pl.cdiv(batch, steps), 8), _MAX_BLOCK_ROWS)


# ---------------------------------- wrapper -----------------------------------
def conv1d_preencoder(src, weights, *, block_rows=None,
                      compute_dtype=jnp.bfloat16, out_dtype=jnp.float32):
    """src: (B, S, V) float.  weights[i]: (C_out, C_in, 3) (PyTorch layout).

    compute_dtype: MXU operand dtype for the folded conv matmuls and the mask
    seg-matmul (bf16 = single-pass MXU, f32 accumulation; use jnp.float32 for
    a bit-tight match to the f32 reference).  out_dtype: stored output dtype.
    """
    batch, seq, vec = src.shape
    assert (seq, vec) == (SEQ_LEN, VECTOR_SIZE)

    x2d = src.reshape(batch, ROW).astype(jnp.float32)      # lane-dense (B, 256)

    # Static, host-side constants (numpy): folded conv/pool matrices + seg.
    w_big = _fold_weights(weights, compute_dtype)
    seg = _SEG_F32.astype(compute_dtype)

    tb = _pick_block_rows(batch) if block_rows is None else int(block_rows)
    tb = max(1, min(tb, batch))
    if tb < batch and tb % 8:
        tb = _round_up(tb, 8)                              # (8,128) sublane rule
    grid = (pl.cdiv(batch, tb),)                           # ragged last block OK

    in_specs = [pl.BlockSpec((tb, ROW), lambda i: (i, 0)),
                pl.BlockSpec(seg.shape, lambda i: (0, 0))]
    in_specs += [pl.BlockSpec(wb.shape, lambda i: (0, 0)) for wb in w_big]

    out2d = pl.pallas_call(
        conv1d_preencoder_kernel,
        out_shape=jax.ShapeDtypeStruct((batch, ROW), out_dtype),
        grid=grid,
        in_specs=in_specs,
        out_specs=pl.BlockSpec((tb, ROW), lambda i: (i, 0)),
        compiler_params=pltpu.CompilerParams(
            dimension_semantics=("parallel",),
            vmem_limit_bytes=40 * 1024 * 1024),
    )(x2d, seg, *w_big)
    return out2d.reshape(batch, SEQ_LEN, VECTOR_SIZE)


# ------------------------------ pure-JAX reference -----------------------------
def reference_forward(src, weights):
    B, S, V = src.shape
    valid = jnp.ones((B, S, 1), dtype=jnp.bool_)
    for idx in (SRC_PAD_IDX, BOS_IDX, EOS_IDX):
        if idx:
            summed = jnp.sum((src != float(idx)).astype(jnp.float32),
                             axis=-1, keepdims=True) / float(VECTOR_SIZE)
            valid = jnp.logical_and(valid, summed > 0.0)
    mask = valid.astype(src.dtype)
    x = (src * mask).reshape(B * S, VEC_SIZE, CHANNELS).transpose(0, 2, 1)  # NCW
    for w in weights:
        x = jax.lax.conv_general_dilated(
            x, w, window_strides=(1,), padding='SAME',
            dimension_numbers=('NCH', 'OIH', 'NCH'))
        x = jax.lax.reduce_window(x, -jnp.inf, jax.lax.max,
                                  (1, 1, 2), (1, 1, 2), 'VALID')
    x = x.transpose(0, 2, 1).reshape(B, S, V)
    return x * mask


# ------------------------------------ main -------------------------------------
if __name__ == "__main__":
    key = jax.random.PRNGKey(0)

    # Parameters (shapes per Conv1DPreencoder._build_layers), deterministic.
    weights = []
    ch = CHANNELS
    for _ in range(N_CONV_LAYERS):
        key, wk = jax.random.split(key)
        weights.append(jax.random.normal(wk, (ch * 2, ch, 3), dtype=jnp.float32) * 0.2)
        ch *= 2

    # Small deterministic input; include all-pad / all-BOS / all-EOS token rows
    # so the masking path is exercised.
    B = 2
    key, xk = jax.random.split(key)
    src = jax.random.uniform(xk, (B, SEQ_LEN, VECTOR_SIZE),
                             dtype=jnp.float32, minval=0.0, maxval=5.0)
    src = src.at[0, 0, :].set(float(SRC_PAD_IDX))
    src = src.at[1, 1, :].set(float(BOS_IDX))
    src = src.at[1, 2, :].set(float(EOS_IDX))

    ref = jax.block_until_ready(reference_forward(src, weights))

    # 1) Exact path (f32 matmuls): structural correctness at tight tolerance.
    out_f32 = jax.block_until_ready(
        conv1d_preencoder(src, weights, compute_dtype=jnp.float32))
    assert out_f32.shape == src.shape
    assert jnp.allclose(out_f32, ref, atol=1e-3, rtol=1e-3), \
        "f32 path mismatch vs reference (B=2)"

    # 2) Optimized path (bf16 MXU operands, f32 accumulation): validate to a
    #    bf16-appropriate scale-relative bound; mask result must stay exact.
    out_bf16 = jax.block_until_ready(conv1d_preencoder(src, weights))
    rel = float(jnp.max(jnp.abs(out_bf16 - ref)) / (jnp.max(jnp.abs(ref)) + 1e-6))
    assert rel < 3e-2, f"bf16 path relative error too large: {rel}"
    assert float(jnp.max(jnp.abs(out_bf16[0, 0]))) == 0.0   # pad token zeroed
    assert float(jnp.max(jnp.abs(out_bf16[1, 1]))) == 0.0   # bos token zeroed
    assert float(jnp.max(jnp.abs(out_bf16[1, 2]))) == 0.0   # eos token zeroed

    # 3) Multi-step grid path (2 blocks of 16 rows) on the bf16 fast path.
    key, xk2 = jax.random.split(key)
    src_big = jax.random.uniform(xk2, (32, SEQ_LEN, VECTOR_SIZE),
                                 dtype=jnp.float32, minval=0.0, maxval=5.0)
    src_big = src_big.at[5, 3, :].set(float(SRC_PAD_IDX))
    ref_big = jax.block_until_ready(reference_forward(src_big, weights))
    out_big = jax.block_until_ready(
        conv1d_preencoder(src_big, weights, block_rows=16))
    rel_big = float(jnp.max(jnp.abs(out_big - ref_big)) /
                    (jnp.max(jnp.abs(ref_big)) + 1e-6))
    assert rel_big < 3e-2, f"bf16 multi-step relative error too large: {rel_big}"
    assert float(jnp.max(jnp.abs(out_big[5, 3]))) == 0.0

    print("KERNEL_OK")
</pallas_src>

<mosaic_0001>
module attributes {stable_mosaic.version = 11 : i64} {
  func.func @conv1d_preencoder_kernel(%arg0: i32, %arg1: memref<2x256xf32, #tpu.memory_space<vmem>>, %arg2: memref<256x256xf32, #tpu.memory_space<vmem>>, %arg3: memref<256x512xf32, #tpu.memory_space<vmem>>, %arg4: memref<256x512xf32, #tpu.memory_space<vmem>>, %arg5: memref<2x256xf32, #tpu.memory_space<vmem>>) attributes {dimension_semantics = [#tpu.dimension_semantics<parallel>], iteration_bounds = array<i64: 1>, scalar_prefetch = 0 : i64, scratch_operands = 0 : i64, tpu.core_type = #tpu.core_type<tc>, window_params = [{transform_indices = @transform_0, window_bounds = array<i64: 2, 256>}, {pipeline_mode = #tpu.pipeline_mode<synchronous>, transform_indices = @transform_1, window_bounds = array<i64: 256, 256>}, {pipeline_mode = #tpu.pipeline_mode<synchronous>, transform_indices = @transform_2, window_bounds = array<i64: 256, 512>}, {pipeline_mode = #tpu.pipeline_mode<synchronous>, transform_indices = @transform_3, window_bounds = array<i64: 256, 512>}, {transform_indices = @transform_4, window_bounds = array<i64: 2, 256>}]} {
    %c0 = arith.constant 0 : index
    %c0_0 = arith.constant 0 : index
    %0 = vector.load %arg1[%c0, %c0_0] : memref<2x256xf32, #tpu.memory_space<vmem>>, vector<2x256xf32>
    %c0_1 = arith.constant 0 : index
    %c0_2 = arith.constant 0 : index
    %1 = vector.load %arg3[%c0_1, %c0_2] : memref<256x512xf32, #tpu.memory_space<vmem>>, vector<256x512xf32>
    %cst = arith.constant dense<0.000000e+00> : vector<2x512xf32>
    %2 = tpu.matmul %0, %1, %cst {dimension_numbers = #tpu.dot_dimension_numbers<[1], [0], [0], [1], [0, 0, 1, 1], [], []>} : vector<2x256xf32>, vector<256x512xf32>, vector<2x512xf32> -> vector<2x512xf32>
    %3 = vector.extract_strided_slice %2 {offsets = [0, 0], sizes = [2, 256], strides = [1, 1]} : vector<2x512xf32> to vector<2x256xf32>
    %4 = vector.extract_strided_slice %2 {offsets = [0, 256], sizes = [2, 256], strides = [1, 1]} : vector<2x512xf32> to vector<2x256xf32>
    %5 = arith.maximumf %3, %4 : vector<2x256xf32>
    %c0_3 = arith.constant 0 : index
    %c0_4 = arith.constant 0 : index
    %6 = vector.load %arg4[%c0_3, %c0_4] : memref<256x512xf32, #tpu.memory_space<vmem>>, vector<256x512xf32>
    %cst_5 = arith.constant dense<0.000000e+00> : vector<2x512xf32>
    %7 = tpu.matmul %5, %6, %cst_5 {dimension_numbers = #tpu.dot_dimension_numbers<[1], [0], [0], [1], [0, 0, 1, 1], [], []>} : vector<2x256xf32>, vector<256x512xf32>, vector<2x512xf32> -> vector<2x512xf32>
    %8 = vector.extract_strided_slice %7 {offsets = [0, 0], sizes = [2, 256], strides = [1, 1]} : vector<2x512xf32> to vector<2x256xf32>
    %9 = vector.extract_strided_slice %7 {offsets = [0, 256], sizes = [2, 256], strides = [1, 1]} : vector<2x512xf32> to vector<2x256xf32>
    %10 = arith.maximumf %8, %9 : vector<2x256xf32>
    %cst_6 = arith.constant 1.000000e+00 : f32
    %11 = vector.broadcast %cst_6 : f32 to vector<2x256xf32>
    %12 = arith.cmpf oeq, %0, %11 : vector<2x256xf32>
    %13 = arith.extui %12 : vector<2x256xi1> to vector<2x256xi32>
    %14 = arith.sitofp %13 : vector<2x256xi32> to vector<2x256xf32>
    %cst_7 = arith.constant 1.000000e+00 : f32
    %15 = vector.broadcast %cst_7 : f32 to vector<2x256xf32>
    %16 = arith.mulf %14, %15 : vector<2x256xf32>
    %cst_8 = arith.constant 2.000000e+00 : f32
    %17 = vector.broadcast %cst_8 : f32 to vector<2x256xf32>
    %18 = arith.cmpf oeq, %0, %17 : vector<2x256xf32>
    %19 = arith.extui %18 : vector<2x256xi1> to vector<2x256xi32>
    %20 = arith.sitofp %19 : vector<2x256xi32> to vector<2x256xf32>
    %cst_9 = arith.constant 6.400000e+01 : f32
    %21 = vector.broadcast %cst_9 : f32 to vector<2x256xf32>
    %22 = arith.mulf %20, %21 : vector<2x256xf32>
    %23 = arith.addf %16, %22 : vector<2x256xf32>
    %cst_10 = arith.constant 3.000000e+00 : f32
    %24 = vector.broadcast %cst_10 : f32 to vector<2x256xf32>
    %25 = arith.cmpf oeq, %0, %24 : vector<2x256xf32>
    %26 = arith.extui %25 : vector<2x256xi1> to vector<2x256xi32>
    %27 = arith.sitofp %26 : vector<2x256xi32> to vector<2x256xf32>
    %cst_11 = arith.constant 4.096000e+03 : f32
    %28 = vector.broadcast %cst_11 : f32 to vector<2x256xf32>
    %29 = arith.mulf %27, %28 : vector<2x256xf32>
    %30 = arith.addf %23, %29 : vector<2x256xf32>
    %c0_12 = arith.constant 0 : index
    %c0_13 = arith.constant 0 : index
    %31 = vector.load %arg2[%c0_12, %c0_13] : memref<256x256xf32, #tpu.memory_space<vmem>>, vector<256x256xf32>
    %cst_14 = arith.constant dense<0.000000e+00> : vector<2x256xf32>
    %32 = tpu.matmul %30, %31, %cst_14 {dimension_numbers = #tpu.dot_dimension_numbers<[1], [0], [0], [1], [0, 0, 1, 1], [], []>} : vector<2x256xf32>, vector<256x256xf32>, vector<2x256xf32> -> vector<2x256xf32>
    %cst_15 = arith.constant 3.200000e+01 : f32
    %33 = vector.broadcast %cst_15 : f32 to vector<2x256xf32>
    %34 = arith.cmpf oeq, %32, %33 : vector<2x256xf32>
    %cst_16 = arith.constant 2.048000e+03 : f32
    %35 = vector.broadcast %cst_16 : f32 to vector<2x256xf32>
    %36 = arith.cmpf oeq, %32, %35 : vector<2x256xf32>
    %37 = arith.ori %34, %36 : vector<2x256xi1>
    %cst_17 = arith.constant 1.310720e+05 : f32
    %38 = vector.broadcast %cst_17 : f32 to vector<2x256xf32>
    %39 = arith.cmpf oeq, %32, %38 : vector<2x256xf32>
    %40 = arith.ori %37, %39 : vector<2x256xi1>
    %41 = arith.extui %40 : vector<2x256xi1> to vector<2x256xi32>
    %42 = arith.sitofp %41 : vector<2x256xi32> to vector<2x256xf32>
    %cst_18 = arith.constant 1.000000e+00 : f32
    %43 = vector.broadcast %cst_18 : f32 to vector<2x256xf32>
    %44 = arith.subf %43, %42 : vector<2x256xf32>
    %45 = arith.mulf %10, %44 : vector<2x256xf32>
    %c0_19 = arith.constant 0 : index
    %c0_20 = arith.constant 0 : index
    %46 = vector.load %arg5[%c0_19, %c0_20] : memref<2x256xf32, #tpu.memory_space<vmem>>, vector<2x256xf32>
    tpu.vector_store %arg5[%c0_19, %c0_20], %45 {strides = array<i32>} : memref<2x256xf32, #tpu.memory_space<vmem>>, vector<2x256xf32>,
    return
  }
  func.func @transform_0(%arg0: i32) -> (i32, i32) {
    %c0_i32 = arith.constant 0 : i32
    %c0_i32_0 = arith.constant 0 : i32
    return %arg0, %c0_i32 : i32, i32
  }
  func.func @transform_1(%arg0: i32) -> (i32, i32) {
    %c0_i32 = arith.constant 0 : i32
    %c0_i32_0 = arith.constant 0 : i32
    %c0_i32_1 = arith.constant 0 : i32
    return %c0_i32, %c0_i32_0 : i32, i32
  }
  func.func @transform_2(%arg0: i32) -> (i32, i32) {
    %c0_i32 = arith.constant 0 : i32
    %c0_i32_0 = arith.constant 0 : i32
    %c0_i32_1 = arith.constant 0 : i32
    return %c0_i32, %c0_i32_0 : i32, i32
  }
  func.func @transform_3(%arg0: i32) -> (i32, i32) {
    %c0_i32 = arith.constant 0 : i32
    %c0_i32_0 = arith.constant 0 : i32
    %c0_i32_1 = arith.constant 0 : i32
    return %c0_i32, %c0_i32_0 : i32, i32
  }
  func.func @transform_4(%arg0: i32) -> (i32, i32) {
    %c0_i32 = arith.constant 0 : i32
    %c0_i32_0 = arith.constant 0 : i32
    return %arg0, %c0_i32 : i32, i32
  }
}

</mosaic_0001>

<bundles_post_ra>
// kernel: tpu_custom_call.1
= control target key start
LH: loop header
LB: loop body
LE: loop exit
PB: predicated region body
PF: predicated region fallthrough
CT: control target
= control target key end

     0   :  { %9 = vsyncpa [#allocation3], 0  ;;  %s1083_s0 = inlined_call_operand.hbm [shape: f32[2,256], index: 0, kind: input, shape index: {}]   ;;  %s1084_s1 = inlined_call_operand.hbm [shape: f32[256,256], index: 1, kind: input, shape index: {}]   ;;  %s1085_s2 = inlined_call_operand.hbm [shape: f32[256,512], index: 2, kind: input, shape index: {}]   ;;  %s1086_s3 = inlined_call_operand.hbm [shape: f32[256,512], index: 3, kind: input, shape index: {}]   ;;  %s1087_s4 = inlined_call_operand.hbm [shape: f32[2,256], index: 4, kind: output, shape index: {}]  }
   0x1   :  { %10 = vsyncpa [#allocation6], 0 }
   0x2   :  { %11 = vsyncpa [#allocation9], 0  ;;  %s28_s17 = sshll.u32 %s1084_s1, 4  ;;  %s29_s17 = int_to_ptr.hbm [resolvable:$true] %s28_s17 }
   0x3   :  { %12 = vsyncpa [#allocation4], 0  ;;  %s1016_s18 = smov [#allocation5]   ;;  %s18_s22 = sshll.u32 %s1083_s0, 4  ;;  %s19_s22 = int_to_ptr.hbm [resolvable:$true] %s18_s22 }
   0x4   :  { %s30_s19 = sshll.u32 %s1016_s18, 4  ;;  %s1017_s23 = smov 256   ;;  %s31_s19 = int_to_ptr.vmem [resolvable:$true] %s30_s19 }
   0x5   :  { %s1018_s24 = smov 16   ;;  %s1019_s25 = smov [#allocation2]  }
   0x6   :  { %36 = dma.hbm_to_vmem [thread:$0]  %s29_s17, 8192, %s31_s19, [#allocation6], %s1017_s23, %s1017_s23, %s1018_s24  }
   0x7   :  { %s20_s26 = sshll.u32 %s1019_s25, 4  ;;  %s41_s29 = sshll.u32 %s1085_s2, 4  ;;  %s21_s26 = int_to_ptr.vmem [resolvable:$true] %s20_s26  ;;  %s42_s29 = int_to_ptr.hbm [resolvable:$true] %s41_s29 }
   0x8   :  { %23 = dma.hbm_to_vmem [thread:$0]  %s19_s22, 64, %s21_s26, [#allocation3]  }
   0x9   :  { %s1020_s1 = smov [#allocation7]   ;;  %s54_s0 = sshll.u32 %s1086_s3, 4  ;;  %s55_s0 = int_to_ptr.hbm [resolvable:$true] %s54_s0 }
   0xa   :  { %s43_s30 = sshll.u32 %s1020_s1, 4  ;;  %s1021_s7 = smov 512   ;;  %s44_s30 = int_to_ptr.vmem [resolvable:$true] %s43_s30 }
   0xb   :  { %s1022_s8 = smov 32   ;;  %s1023_s9 = smov [#allocation8]  }
   0xc   :  { %49 = dma.hbm_to_vmem [thread:$0]  %s42_s29, 16384, %s44_s30, [#allocation6], %s1021_s7, %s1021_s7, %s1022_s8  }
   0xd   :  { %s56_s10 = sshll.u32 %s1023_s9, 4  ;;  %s57_s10 = int_to_ptr.vmem [resolvable:$true] %s56_s10 }
   0xe   :  { %62 = dma.hbm_to_vmem [thread:$0]  %s55_s0, 16384, %s57_s10, [#allocation9], %s1021_s7, %s1021_s7, %s1022_s8  }
   0xf   :  { %1008 = dma.done.wait [#allocation3], 64  }
  0x10   :  { %1009 = vsyncadd [#allocation3], 4294967232 }
  0x11   :  { %1010 = dma.done.wait [#allocation6], 24576  }
  0x12   :  { %1011 = vsyncadd [#allocation6], 4294942720 }
  0x13   :  { %1012 = dma.done.wait [#allocation9], 16384  }
  0x14   :  { %1013 = vsyncadd [#allocation9], 4294950912  ;;  %v140_v0 = vld [vmem:[#allocation7 + $0x1e0] sm:$0xff]  ;;  %v141_v2 = vld [vmem:[#allocation7 + $0x1e8] sm:$0xff]  ;;  %s1025_s2 = smov [#allocation10]   ;;  %s861_s13 = sshll.u32 %s1087_s4, 4  ;;  %s862_s13 = int_to_ptr.hbm [resolvable:$true] %s861_s13 }
  0x15   :  { %v204_v1 = vld [vmem:[#allocation7 + $0x3e0] sm:$0xff]  ;;  %214 = vmatpush.msra.mxu0 %v140_v0  ;;  %v205_v3 = vld [vmem:[#allocation7 + $0x3e8] sm:$0xff]  ;;  %254 = vmatpush.msra.mxu2 %v141_v2  ;;  %v142_v0 = vld [vmem:[#allocation7 + $0x1f0] sm:$0xff]  ;;  %s859_s3 = sshll.u32 %s1025_s2, 4  ;;  %vm850_vm13 = vcmask 1041408   ;;  %s860_s3 = int_to_ptr.vmem [resolvable:$true] %s859_s3 }
  0x16   :  { %234 = vmatpush.msra.mxu1 %v204_v1  ;;  %v136_v4 = vld [vmem:[#allocation7 + $0x1c0] sm:$0xff]  ;;  %274 = vmatpush.msra.mxu3 %v205_v3  ;;  %v137_v6 = vld [vmem:[#allocation7 + $0x1c8] sm:$0xff]  ;;  %v206_v1 = vld [vmem:[#allocation7 + $0x3f0] sm:$0xff] }
  0x17   :  { %v200_v5 = vld [vmem:[#allocation7 + $0x3c0] sm:$0xff]  ;;  %v201_v7 = vld [vmem:[#allocation7 + $0x3c8] sm:$0xff]  ;;  %215 = vmatpush.msra.mxu0 %v136_v4  ;;  %255 = vmatpush.msra.mxu2 %v137_v6  ;;  %v143_v2 = vld [vmem:[#allocation7 + $0x1f8] sm:$0xff] }
  0x18   :  { %v132_v8 = vld [vmem:[#allocation7 + $0x1a0] sm:$0xff]  ;;  %235 = vmatpush.msra.mxu1 %v200_v5  ;;  %v133_v10 = vld [vmem:[#allocation7 + $0x1a8] sm:$0xff]  ;;  %275 = vmatpush.msra.mxu3 %v201_v7  ;;  %v207_v3 = vld [vmem:[#allocation7 + $0x3f8] sm:$0xff] }
  0x19   :  { %v196_v9 = vld [vmem:[#allocation7 + $0x3a0] sm:$0xff]  ;;  %v197_v11 = vld [vmem:[#allocation7 + $0x3a8] sm:$0xff]  ;;  %216 = vmatpush.msra.mxu0 %v132_v8  ;;  %256 = vmatpush.msra.mxu2 %v133_v10  ;;  %v138_v4 = vld [vmem:[#allocation7 + $0x1d0] sm:$0xff] }
  0x1a   :  { %v128_v12 = vld [vmem:[#allocation7 + $0x180] sm:$0xff]  ;;  %236 = vmatpush.msra.mxu1 %v196_v9  ;;  %v129_v14 = vld [vmem:[#allocation7 + $0x188] sm:$0xff]  ;;  %276 = vmatpush.msra.mxu3 %v197_v11  ;;  %v202_v5 = vld [vmem:[#allocation7 + $0x3d0] sm:$0xff] }
  0x1b   :  { %v192_v13 = vld [vmem:[#allocation7 + $0x380] sm:$0xff]  ;;  %v193_v15 = vld [vmem:[#allocation7 + $0x388] sm:$0xff]  ;;  %217 = vmatpush.msra.mxu0 %v128_v12  ;;  %257 = vmatpush.msra.mxu2 %v129_v14  ;;  %v139_v6 = vld [vmem:[#allocation7 + $0x1d8] sm:$0xff] }
  0x1c   :  { %v124_v16 = vld [vmem:[#allocation7 + $0x160] sm:$0xff]  ;;  %237 = vmatpush.msra.mxu1 %v192_v13  ;;  %v125_v18 = vld [vmem:[#allocation7 + $0x168] sm:$0xff]  ;;  %277 = vmatpush.msra.mxu3 %v193_v15  ;;  %v203_v7 = vld [vmem:[#allocation7 + $0x3d8] sm:$0xff] }
  0x1d   :  { %v188_v17 = vld [vmem:[#allocation7 + $0x360] sm:$0xff]  ;;  %v189_v19 = vld [vmem:[#allocation7 + $0x368] sm:$0xff]  ;;  %218 = vmatpush.msra.mxu0 %v124_v16  ;;  %258 = vmatpush.msra.mxu2 %v125_v18  ;;  %v134_v8 = vld [vmem:[#allocation7 + $0x1b0] sm:$0xff] }
  0x1e   :  { %v120_v20 = vld [vmem:[#allocation7 + $0x140] sm:$0xff]  ;;  %238 = vmatpush.msra.mxu1 %v188_v17  ;;  %v121_v22 = vld [vmem:[#allocation7 + $0x148] sm:$0xff]  ;;  %278 = vmatpush.msra.mxu3 %v189_v19  ;;  %v198_v9 = vld [vmem:[#allocation7 + $0x3b0] sm:$0xff] }
  0x1f   :  { %v184_v21 = vld [vmem:[#allocation7 + $0x340] sm:$0xff]  ;;  %v185_v23 = vld [vmem:[#allocation7 + $0x348] sm:$0xff]  ;;  %219 = vmatpush.msra.mxu0 %v120_v20  ;;  %259 = vmatpush.msra.mxu2 %v121_v22  ;;  %v135_v10 = vld [vmem:[#allocation7 + $0x1b8] sm:$0xff] }
  0x20   :  { %v116_v24 = vld [vmem:[#allocation7 + $0x120] sm:$0xff]  ;;  %239 = vmatpush.msra.mxu1 %v184_v21  ;;  %v117_v26 = vld [vmem:[#allocation7 + $0x128] sm:$0xff]  ;;  %279 = vmatpush.msra.mxu3 %v185_v23  ;;  %v199_v11 = vld [vmem:[#allocation7 + $0x3b8] sm:$0xff]  ;;  %v1024_v21 = vmov 0.0  }
  0x21   :  { %v180_v25 = vld [vmem:[#allocation7 + $0x320] sm:$0xff]  ;;  %v181_v27 = vld [vmem:[#allocation7 + $0x328] sm:$0xff]  ;;  %220 = vmatpush.msra.mxu0 %v116_v24  ;;  %260 = vmatpush.msra.mxu2 %v117_v26  ;;  %v130_v12 = vld [vmem:[#allocation7 + $0x190] sm:$0xff] }
  0x22   :  { %v112_v28 = vld [vmem:[#allocation7 + $0x100] sm:$0xff]  ;;  %240 = vmatpush.msra.mxu1 %v180_v25  ;;  %v113_v30 = vld [vmem:[#allocation7 + $0x108] sm:$0xff]  ;;  %280 = vmatpush.msra.mxu3 %v181_v27  ;;  %v194_v13 = vld [vmem:[#allocation7 + $0x390] sm:$0xff] }
  0x23   :  { %v176_v29 = vld [vmem:[#allocation7 + $0x300] sm:$0xff]  ;;  %v177_v31 = vld [vmem:[#allocation7 + $0x308] sm:$0xff]  ;;  %221 = vmatpush.msra.mxu0 %v112_v28  ;;  %261 = vmatpush.msra.mxu2 %v113_v30  ;;  %v131_v14 = vld [vmem:[#allocation7 + $0x198] sm:$0xff] }
  0x24   :  { %v108_v32 = vld [vmem:[#allocation7 + $0xe0] sm:$0xff]  ;;  %241 = vmatpush.msra.mxu1 %v176_v29  ;;  %v109_v34 = vld [vmem:[#allocation7 + $0xe8] sm:$0xff]  ;;  %281 = vmatpush.msra.mxu3 %v177_v31  ;;  %v195_v15 = vld [vmem:[#allocation7 + $0x398] sm:$0xff] }
  0x25   :  { %v172_v33 = vld [vmem:[#allocation7 + $0x2e0] sm:$0xff]  ;;  %v173_v35 = vld [vmem:[#allocation7 + $0x2e8] sm:$0xff]  ;;  %222 = vmatpush.msra.mxu0 %v108_v32  ;;  %262 = vmatpush.msra.mxu2 %v109_v34  ;;  %v126_v16 = vld [vmem:[#allocation7 + $0x170] sm:$0xff] }
  0x26   :  { %v104_v36 = vld [vmem:[#allocation7 + $0xc0] sm:$0xff]  ;;  %242 = vmatpush.msra.mxu1 %v172_v33  ;;  %v105_v38 = vld [vmem:[#allocation7 + $0xc8] sm:$0xff]  ;;  %282 = vmatpush.msra.mxu3 %v173_v35  ;;  %v79_v17 = vld [vmem:[#allocation2] sm:$0xf] }
  0x27   :  { %v168_v37 = vld [vmem:[#allocation7 + $0x2c0] sm:$0xff]  ;;  %v169_v39 = vld [vmem:[#allocation7 + $0x2c8] sm:$0xff]  ;;  %223 = vmatpush.msra.mxu0 %v104_v36  ;;  %263 = vmatpush.msra.mxu2 %v105_v38  ;;  %v190_v18 = vld [vmem:[#allocation7 + $0x370] sm:$0xff]  ;;  %209 = vst [vmem:[#allocation1] ss:$4 sm:$0xff] %v79_v17  ;;  %vm666_vm0 = vcmp.eq.f32.partialorder %v79_v17, 1.0 }
  0x28   :  { %v100_v40 = vld [vmem:[#allocation7 + $0xa0] sm:$0xff]  ;;  %243 = vmatpush.msra.mxu1 %v168_v37  ;;  %v101_v42 = vld [vmem:[#allocation7 + $0xa8] sm:$0xff]  ;;  %283 = vmatpush.msra.mxu3 %v169_v39  ;;  %vm669_vm1 = vcmp.eq.f32.partialorder %v79_v17, 2.0  ;;  %vm674_vm2 = vcmp.eq.f32.partialorder %v79_v17, 3.0  ;;  %v127_v19 = vld [vmem:[#allocation7 + $0x178] sm:$0xff]  ;;  %v873_v22 = vsel %vm666_vm0, 1.0, %v1024_v21 }
  0x29   :  { %v164_v41 = vld [vmem:[#allocation7 + $0x2a0] sm:$0xff]  ;;  %v165_v43 = vld [vmem:[#allocation7 + $0x2a8] sm:$0xff]  ;;  %224 = vmatpush.msra.mxu0 %v100_v40  ;;  %264 = vmatpush.msra.mxu2 %v101_v42  ;;  %v191_v20 = vld [vmem:[#allocation7 + $0x378] sm:$0xff]  ;;  %v874_v23 = vsel %vm669_vm1, 1.0, %v1024_v21  ;;  %v875_v24 = vsel %vm674_vm2, 1.0, %v1024_v21 }
  0x2a   :  { %v96_v44 = vld [vmem:[#allocation7 + $0x80] sm:$0xff]  ;;  %244 = vmatpush.msra.mxu1 %v164_v41  ;;  %v97_v46 = vld [vmem:[#allocation7 + $0x88] sm:$0xff]  ;;  %284 = vmatpush.msra.mxu3 %v165_v43  ;;  %v122_v25 = vld [vmem:[#allocation7 + $0x150] sm:$0xff]  ;;  %v672_v27 = vmul.f32 64.0, %v874_v23  ;;  %v677_v28 = vmul.f32 4096.0, %v875_v24 }
  0x2b   :  { %v160_v45 = vld [vmem:[#allocation7 + $0x280] sm:$0xff]  ;;  %v161_v47 = vld [vmem:[#allocation7 + $0x288] sm:$0xff]  ;;  %225 = vmatpush.msra.mxu0 %v96_v44  ;;  %265 = vmatpush.msra.mxu2 %v97_v46  ;;  %v186_v26 = vld [vmem:[#allocation7 + $0x350] sm:$0xff] }
  0x2c   :  { %v92_v48 = vld [vmem:[#allocation7 + $0x60] sm:$0xff]  ;;  %245 = vmatpush.msra.mxu1 %v160_v45  ;;  %v93_v50 = vld [vmem:[#allocation7 + $0x68] sm:$0xff]  ;;  %285 = vmatpush.msra.mxu3 %v161_v47  ;;  %v123_v29 = vld [vmem:[#allocation7 + $0x158] sm:$0xff]  ;;  %v673_v33 = vadd.f32 %v873_v22, %v672_v27 }
  0x2d   :  { %v156_v49 = vld [vmem:[#allocation7 + $0x260] sm:$0xff]  ;;  %v157_v51 = vld [vmem:[#allocation7 + $0x268] sm:$0xff]  ;;  %226 = vmatpush.msra.mxu0 %v92_v48  ;;  %266 = vmatpush.msra.mxu2 %v93_v50  ;;  %v187_v30 = vld [vmem:[#allocation7 + $0x358] sm:$0xff] }
  0x2e   :  { %v88_v52 = vld [vmem:[#allocation7 + $0x40] sm:$0xff]  ;;  %246 = vmatpush.msra.mxu1 %v156_v49  ;;  %v89_v54 = vld [vmem:[#allocation7 + $0x48] sm:$0xff]  ;;  %286 = vmatpush.msra.mxu3 %v157_v51  ;;  %v118_v31 = vld [vmem:[#allocation7 + $0x130] sm:$0xff]  ;;  %v678_v40 = vadd.f32 %v677_v28, %v673_v33 }
  0x2f   :  { %v152_v53 = vld [vmem:[#allocation7 + $0x240] sm:$0xff]  ;;  %v153_v55 = vld [vmem:[#allocation7 + $0x248] sm:$0xff]  ;;  %227 = vmatpush.msra.mxu0 %v88_v52  ;;  %267 = vmatpush.msra.mxu2 %v89_v54  ;;  %v182_v32 = vld [vmem:[#allocation7 + $0x330] sm:$0xff] }
  0x30   :  { %v84_v56 = vld [vmem:[#allocation7 + $0x20] sm:$0xff]  ;;  %247 = vmatpush.msra.mxu1 %v152_v53  ;;  %v85_v58 = vld [vmem:[#allocation7 + $0x28] sm:$0xff]  ;;  %287 = vmatpush.msra.mxu3 %v153_v55  ;;  %v119_v34 = vld [vmem:[#allocation7 + $0x138] sm:$0xff] }
  0x31   :  { %v148_v57 = vld [vmem:[#allocation7 + $0x220] sm:$0xff]  ;;  %v149_v59 = vld [vmem:[#allocation7 + $0x228] sm:$0xff]  ;;  %228 = vmatpush.msra.mxu0 %v84_v56  ;;  %268 = vmatpush.msra.mxu2 %v85_v58  ;;  %v183_v35 = vld [vmem:[#allocation7 + $0x338] sm:$0xff] }
  0x32   :  { %v80_v60 = vld [vmem:[#allocation7] sm:$0xff]  ;;  %248 = vmatpush.msra.mxu1 %v148_v57  ;;  %v81_v62 = vld [vmem:[#allocation7 + $0x8] sm:$0xff]  ;;  %288 = vmatpush.msra.mxu3 %v149_v59  ;;  %v114_v36 = vld [vmem:[#allocation7 + $0x110] sm:$0xff] }
  0x33   :  { %v144_v61 = vld [vmem:[#allocation7 + $0x200] sm:$0xff]  ;;  %v145_v63 = vld [vmem:[#allocation7 + $0x208] sm:$0xff]  ;;  %229 = vmatpush.msra.mxu0 %v80_v60  ;;  %269 = vmatpush.msra.mxu2 %v81_v62  ;;  %v178_v37 = vld [vmem:[#allocation7 + $0x310] sm:$0xff] }
  0x34   :  { %249 = vmatpush.msra.mxu1 %v144_v61  ;;  %289 = vmatpush.msra.mxu3 %v145_v63  ;;  %v115_v38 = vld [vmem:[#allocation7 + $0x118] sm:$0xff]  ;;  %v110_v43 = vld [vmem:[#allocation7 + $0xf0] sm:$0xff]  ;;  %v433_v17 = vld [vmem:[#allocation8 + $0x1c8] sm:$0xff] }
  0x35   :  { %294 = vmatpush.msrb.mxu0 %v142_v0  ;;  %334 = vmatpush.msrb.mxu2 %v143_v2  ;;  %v179_v39 = vld [vmem:[#allocation7 + $0x318] sm:$0xff]  ;;  %v174_v44 = vld [vmem:[#allocation7 + $0x2f0] sm:$0xff]  ;;  %v429_v22 = vld [vmem:[#allocation8 + $0x1a8] sm:$0xff] }
  0x36   :  { %314 = vmatpush.msrb.mxu1 %v206_v1  ;;  %354 = vmatpush.msrb.mxu3 %v207_v3  ;;  %v1066_v41 = vld.sshfl [vmem:[#allocation1] sm:$0xff pattern:$0x73625140]  ;;  %v1068_v42 = vld.sshfl [vmem:[#allocation1 + $0x8] sm:$0xff pattern:$0x73625140] }
  0x37   :  { %295 = vmatpush.msrb.mxu0 %v138_v4  ;;  %335 = vmatpush.msrb.mxu2 %v139_v6  ;;  %744 = vst [vmem:[#allocation1] ss:$4 sm:$0xff] %v678_v40  ;;  %v111_v45 = vld [vmem:[#allocation7 + $0xf8] sm:$0xff]  ;;  %v106_v47 = vld [vmem:[#allocation7 + $0xd0] sm:$0xff]  ;;  %v493_v23 = vld [vmem:[#allocation8 + $0x3a8] sm:$0xff] }
  0x38   :  { %315 = vmatpush.msrb.mxu1 %v202_v5  ;;  %355 = vmatpush.msrb.mxu3 %v203_v7  ;;  %v175_v46 = vld [vmem:[#allocation7 + $0x2f8] sm:$0xff]  ;;  %v170_v48 = vld [vmem:[#allocation7 + $0x2d0] sm:$0xff]  ;;  %v424_v24 = vld [vmem:[#allocation8 + $0x180] sm:$0xff] }
  0x39   :  { %296 = vmatpush.msrb.mxu0 %v134_v8  ;;  %336 = vmatpush.msrb.mxu2 %v135_v10  ;;  %v107_v49 = vld [vmem:[#allocation7 + $0xd8] sm:$0xff]  ;;  %v102_v51 = vld [vmem:[#allocation7 + $0xb0] sm:$0xff]  ;;  %v489_v27 = vld [vmem:[#allocation8 + $0x388] sm:$0xff] }
  0x3a   :  { %316 = vmatpush.msrb.mxu1 %v198_v9  ;;  %356 = vmatpush.msrb.mxu3 %v199_v11  ;;  %v171_v50 = vld [vmem:[#allocation7 + $0x2d8] sm:$0xff]  ;;  %v166_v52 = vld [vmem:[#allocation7 + $0x2b0] sm:$0xff]  ;;  %v436_v11 = vld [vmem:[#allocation8 + $0x1e0] sm:$0xff] }
  0x3b   :  { %297 = vmatpush.msrb.mxu0 %v130_v12  ;;  %337 = vmatpush.msrb.mxu2 %v131_v14  ;;  %v103_v53 = vld [vmem:[#allocation7 + $0xb8] sm:$0xff]  ;;  %v98_v55 = vld [vmem:[#allocation7 + $0x90] sm:$0xff]  ;;  %v500_v12 = vld [vmem:[#allocation8 + $0x3e0] sm:$0xff] }
  0x3c   :  { %317 = vmatpush.msrb.mxu1 %v194_v13  ;;  %357 = vmatpush.msrb.mxu3 %v195_v15  ;;  %v167_v54 = vld [vmem:[#allocation7 + $0x2b8] sm:$0xff]  ;;  %v162_v56 = vld [vmem:[#allocation7 + $0x290] sm:$0xff]  ;;  %v437_v13 = vld [vmem:[#allocation8 + $0x1e8] sm:$0xff] }
  0x3d   :  { %298 = vmatpush.msrb.mxu0 %v126_v16  ;;  %338 = vmatpush.msrb.mxu2 %v127_v19  ;;  %v99_v57 = vld [vmem:[#allocation7 + $0x98] sm:$0xff]  ;;  %v94_v59 = vld [vmem:[#allocation7 + $0x70] sm:$0xff]  ;;  %v501_v14 = vld [vmem:[#allocation8 + $0x3e8] sm:$0xff] }
  0x3e   :  { %318 = vmatpush.msrb.mxu1 %v190_v18  ;;  %358 = vmatpush.msrb.mxu3 %v191_v20  ;;  %v163_v58 = vld [vmem:[#allocation7 + $0x298] sm:$0xff]  ;;  %v158_v60 = vld [vmem:[#allocation7 + $0x270] sm:$0xff]  ;;  %v432_v15 = vld [vmem:[#allocation8 + $0x1c0] sm:$0xff] }
  0x3f   :  { %299 = vmatpush.msrb.mxu0 %v122_v25  ;;  %339 = vmatpush.msrb.mxu2 %v123_v29  ;;  %v95_v61 = vld [vmem:[#allocation7 + $0x78] sm:$0xff]  ;;  %v90_v63 = vld [vmem:[#allocation7 + $0x50] sm:$0xff]  ;;  %v496_v16 = vld [vmem:[#allocation8 + $0x3c0] sm:$0xff] }
  0x40   :  { %319 = vmatpush.msrb.mxu1 %v186_v26  ;;  %359 = vmatpush.msrb.mxu3 %v187_v30  ;;  %v159_v62 = vld [vmem:[#allocation7 + $0x278] sm:$0xff]  ;;  %v154_v0 = vld [vmem:[#allocation7 + $0x250] sm:$0xff]  ;;  %v497_v18 = vld [vmem:[#allocation8 + $0x3c8] sm:$0xff] }
  0x41   :  { %300 = vmatpush.msrb.mxu0 %v118_v31  ;;  %340 = vmatpush.msrb.mxu2 %v119_v34  ;;  %v91_v1 = vld [vmem:[#allocation7 + $0x58] sm:$0xff]  ;;  %v86_v3 = vld [vmem:[#allocation7 + $0x30] sm:$0xff]  ;;  %v428_v19 = vld [vmem:[#allocation8 + $0x1a0] sm:$0xff] }
  0x42   :  { %320 = vmatpush.msrb.mxu1 %v182_v32  ;;  %360 = vmatpush.msrb.mxu3 %v183_v35  ;;  %v155_v2 = vld [vmem:[#allocation7 + $0x258] sm:$0xff]  ;;  %v150_v4 = vld [vmem:[#allocation7 + $0x230] sm:$0xff]  ;;  %v492_v20 = vld [vmem:[#allocation8 + $0x3a0] sm:$0xff] }
  0x43   :  { %301 = vmatpush.msrb.mxu0 %v114_v36  ;;  %341 = vmatpush.msrb.mxu2 %v115_v38  ;;  %v87_v5 = vld [vmem:[#allocation7 + $0x38] sm:$0xff]  ;;  %v82_v7 = vld [vmem:[#allocation7 + $0x10] sm:$0xff]  ;;  %v488_v25 = vld [vmem:[#allocation8 + $0x380] sm:$0xff] }
  0x44   :  { %321 = vmatpush.msrb.mxu1 %v178_v37  ;;  %361 = vmatpush.msrb.mxu3 %v179_v39  ;;  %v151_v6 = vld [vmem:[#allocation7 + $0x238] sm:$0xff]  ;;  %v146_v8 = vld [vmem:[#allocation7 + $0x210] sm:$0xff]  ;;  %v425_v26 = vld [vmem:[#allocation8 + $0x188] sm:$0xff] }
  0x45   :  { %302 = vmatpush.msrb.mxu0 %v110_v43  ;;  %342 = vmatpush.msrb.mxu2 %v111_v45  ;;  %v83_v9 = vld [vmem:[#allocation7 + $0x18] sm:$0xff]  ;;  %v420_v28 = vld [vmem:[#allocation8 + $0x160] sm:$0xff]  ;;  %v421_v30 = vld [vmem:[#allocation8 + $0x168] sm:$0xff] }
  0x46   :  { %322 = vmatpush.msrb.mxu1 %v174_v44  ;;  %362 = vmatpush.msrb.mxu3 %v175_v46  ;;  %v147_v10 = vld [vmem:[#allocation7 + $0x218] sm:$0xff]  ;;  %v484_v29 = vld [vmem:[#allocation8 + $0x360] sm:$0xff]  ;;  %v485_v31 = vld [vmem:[#allocation8 + $0x368] sm:$0xff] }
  0x47   :  { %303 = vmatpush.msrb.mxu0 %v106_v47  ;;  %343 = vmatpush.msrb.mxu2 %v107_v49  ;;  %v416_v32 = vld [vmem:[#allocation8 + $0x140] sm:$0xff]  ;;  %v417_v34 = vld [vmem:[#allocation8 + $0x148] sm:$0xff] }
  0x48   :  { %323 = vmatpush.msrb.mxu1 %v170_v48  ;;  %363 = vmatpush.msrb.mxu3 %v171_v50  ;;  %v480_v33 = vld [vmem:[#allocation8 + $0x340] sm:$0xff]  ;;  %v481_v35 = vld [vmem:[#allocation8 + $0x348] sm:$0xff] }
  0x49   :  { %304 = vmatpush.msrb.mxu0 %v102_v51  ;;  %344 = vmatpush.msrb.mxu2 %v103_v53  ;;  %v412_v36 = vld [vmem:[#allocation8 + $0x120] sm:$0xff]  ;;  %v413_v38 = vld [vmem:[#allocation8 + $0x128] sm:$0xff] }
  0x4a   :  { %324 = vmatpush.msrb.mxu1 %v166_v52  ;;  %364 = vmatpush.msrb.mxu3 %v167_v54  ;;  %v476_v37 = vld [vmem:[#allocation8 + $0x320] sm:$0xff]  ;;  %v477_v39 = vld [vmem:[#allocation8 + $0x328] sm:$0xff] }
  0x4b   :  { %305 = vmatpush.msrb.mxu0 %v98_v55  ;;  %345 = vmatpush.msrb.mxu2 %v99_v57  ;;  %v408_v40 = vld [vmem:[#allocation8 + $0x100] sm:$0xff]  ;;  %v473_v43 = vld [vmem:[#allocation8 + $0x308] sm:$0xff] }
  0x4c   :  { %325 = vmatpush.msrb.mxu1 %v162_v56  ;;  %365 = vmatpush.msrb.mxu3 %v163_v58  ;;  %v404_v44 = vld [vmem:[#allocation8 + $0xe0] sm:$0xff]  ;;  %v405_v46 = vld [vmem:[#allocation8 + $0xe8] sm:$0xff] }
  0x4d   :  { %230 = vmatmul.f32.vlgmr.msra.gmra.mxu0 %v1066_v41  ;;  %250 = vmatmul.f32.vlgmr.msra.gmra.mxu1 %v1068_v42  ;;  %v468_v45 = vld [vmem:[#allocation8 + $0x2e0] sm:$0xff]  ;;  %v469_v47 = vld [vmem:[#allocation8 + $0x2e8] sm:$0xff] }
  0x4e   :  { %270 = vmatmul.f32.vlgmr.msra.gmra.mxu2 %v1066_v41  ;;  %290 = vmatmul.f32.vlgmr.msra.gmra.mxu3 %v1068_v42  ;;  %v400_v48 = vld [vmem:[#allocation8 + $0xc0] sm:$0xff]  ;;  %v401_v50 = vld [vmem:[#allocation8 + $0xc8] sm:$0xff] }
  0x4f   :  { %306 = vmatpush.msrb.mxu0 %v94_v59  ;;  %326 = vmatpush.msrb.mxu1 %v158_v60  ;;  %v464_v49 = vld [vmem:[#allocation8 + $0x2c0] sm:$0xff]  ;;  %v465_v51 = vld [vmem:[#allocation8 + $0x2c8] sm:$0xff] }
  0x50   :  { %346 = vmatpush.msrb.mxu2 %v95_v61  ;;  %366 = vmatpush.msrb.mxu3 %v159_v62  ;;  %v396_v52 = vld [vmem:[#allocation8 + $0xa0] sm:$0xff]  ;;  %v397_v54 = vld [vmem:[#allocation8 + $0xa8] sm:$0xff] }
  0x51   :  { %307 = vmatpush.msrb.mxu0 %v90_v63  ;;  %327 = vmatpush.msrb.mxu1 %v154_v0  ;;  %v460_v53 = vld [vmem:[#allocation8 + $0x2a0] sm:$0xff]  ;;  %v461_v55 = vld [vmem:[#allocation8 + $0x2a8] sm:$0xff] }
  0x52   :  { %347 = vmatpush.msrb.mxu2 %v91_v1  ;;  %367 = vmatpush.msrb.mxu3 %v155_v2  ;;  %v392_v56 = vld [vmem:[#allocation8 + $0x80] sm:$0xff]  ;;  %v393_v58 = vld [vmem:[#allocation8 + $0x88] sm:$0xff] }
  0x53   :  { %308 = vmatpush.msrb.mxu0 %v86_v3  ;;  %328 = vmatpush.msrb.mxu1 %v150_v4  ;;  %v456_v57 = vld [vmem:[#allocation8 + $0x280] sm:$0xff]  ;;  %v457_v59 = vld [vmem:[#allocation8 + $0x288] sm:$0xff] }
  0x54   :  { %348 = vmatpush.msrb.mxu2 %v87_v5  ;;  %368 = vmatpush.msrb.mxu3 %v151_v6  ;;  %v388_v60 = vld [vmem:[#allocation8 + $0x60] sm:$0xff]  ;;  %v389_v62 = vld [vmem:[#allocation8 + $0x68] sm:$0xff] }
  0x55   :  { %309 = vmatpush.msrb.mxu0 %v82_v7  ;;  %329 = vmatpush.msrb.mxu1 %v146_v8  ;;  %v452_v61 = vld [vmem:[#allocation8 + $0x260] sm:$0xff]  ;;  %v453_v63 = vld [vmem:[#allocation8 + $0x268] sm:$0xff] }
  0x56   :  { %349 = vmatpush.msrb.mxu2 %v83_v9  ;;  %369 = vmatpush.msrb.mxu3 %v147_v10  ;;  %v384_v0 = vld [vmem:[#allocation8 + $0x40] sm:$0xff]  ;;  %v385_v2 = vld [vmem:[#allocation8 + $0x48] sm:$0xff] }
  0x57   :  { %310 = vmatmul.f32.vlgmr.msrb.gmra.mxu0 %v1066_v41  ;;  %330 = vmatmul.f32.vlgmr.msrb.gmra.mxu1 %v1068_v42  ;;  %v448_v1 = vld [vmem:[#allocation8 + $0x240] sm:$0xff]  ;;  %v449_v3 = vld [vmem:[#allocation8 + $0x248] sm:$0xff] }
  0x58   :  { %350 = vmatmul.f32.vlgmr.msrb.gmra.mxu2 %v1066_v41  ;;  %370 = vmatmul.f32.vlgmr.msrb.gmra.mxu3 %v1068_v42  ;;  %v472_v41 = vld [vmem:[#allocation8 + $0x300] sm:$0xff]  ;;  %v409_v42 = vld [vmem:[#allocation8 + $0x108] sm:$0xff] }
  0x59   :  { %504 = vmatpush.msra.mxu0 %v436_v11  ;;  %524 = vmatpush.msra.mxu1 %v500_v12  ;;  %v380_v4 = vld [vmem:[#allocation8 + $0x20] sm:$0xff]  ;;  %v381_v6 = vld [vmem:[#allocation8 + $0x28] sm:$0xff]  ;;  %v438_v12 = vld [vmem:[#allocation8 + $0x1f0] sm:$0xff] }
  0x5a   :  { %544 = vmatpush.msra.mxu2 %v437_v13  ;;  %564 = vmatpush.msra.mxu3 %v501_v14  ;;  %v444_v5 = vld [vmem:[#allocation8 + $0x220] sm:$0xff]  ;;  %v445_v7 = vld [vmem:[#allocation8 + $0x228] sm:$0xff]  ;;  %v502_v13 = vld [vmem:[#allocation8 + $0x3f0] sm:$0xff] }
  0x5b   :  { %505 = vmatpush.msra.mxu0 %v432_v15  ;;  %525 = vmatpush.msra.mxu1 %v496_v16  ;;  %v376_v8 = vld [vmem:[#allocation8] sm:$0xff]  ;;  %v377_v10 = vld [vmem:[#allocation8 + $0x8] sm:$0xff]  ;;  %v439_v14 = vld [vmem:[#allocation8 + $0x1f8] sm:$0xff] }
  0x5c   :  { %545 = vmatpush.msra.mxu2 %v433_v17  ;;  %565 = vmatpush.msra.mxu3 %v497_v18  ;;  %v440_v9 = vld [vmem:[#allocation8 + $0x200] sm:$0xff]  ;;  %v441_v11 = vld [vmem:[#allocation8 + $0x208] sm:$0xff]  ;;  %v503_v15 = vld [vmem:[#allocation8 + $0x3f8] sm:$0xff] }
  0x5d   :  { %506 = vmatpush.msra.mxu0 %v428_v19  ;;  %526 = vmatpush.msra.mxu1 %v492_v20  ;;  %v434_v16 = vld [vmem:[#allocation8 + $0x1d0] sm:$0xff]  ;;  %v435_v18 = vld [vmem:[#allocation8 + $0x1d8] sm:$0xff] }
  0x5e   :  { %546 = vmatpush.msra.mxu2 %v429_v22  ;;  %566 = vmatpush.msra.mxu3 %v493_v23  ;;  %v498_v17 = vld [vmem:[#allocation8 + $0x3d0] sm:$0xff]  ;;  %v499_v19 = vld [vmem:[#allocation8 + $0x3d8] sm:$0xff] }
  0x5f   :  { %507 = vmatpush.msra.mxu0 %v424_v24  ;;  %527 = vmatpush.msra.mxu1 %v488_v25  ;;  %v430_v20 = vld [vmem:[#allocation8 + $0x1b0] sm:$0xff]  ;;  %v431_v23 = vld [vmem:[#allocation8 + $0x1b8] sm:$0xff] }
  0x60   :  { %547 = vmatpush.msra.mxu2 %v425_v26  ;;  %567 = vmatpush.msra.mxu3 %v489_v27  ;;  %v494_v22 = vld [vmem:[#allocation8 + $0x3b0] sm:$0xff]  ;;  %v495_v24 = vld [vmem:[#allocation8 + $0x3b8] sm:$0xff] }
  0x61   :  { %508 = vmatpush.msra.mxu0 %v420_v28  ;;  %528 = vmatpush.msra.mxu1 %v484_v29  ;;  %v426_v25 = vld [vmem:[#allocation8 + $0x190] sm:$0xff]  ;;  %v427_v27 = vld [vmem:[#allocation8 + $0x198] sm:$0xff] }
  0x62   :  { %548 = vmatpush.msra.mxu2 %v421_v30  ;;  %568 = vmatpush.msra.mxu3 %v485_v31  ;;  %v490_v26 = vld [vmem:[#allocation8 + $0x390] sm:$0xff]  ;;  %v491_v28 = vld [vmem:[#allocation8 + $0x398] sm:$0xff] }
  0x63   :  { %509 = vmatpush.msra.mxu0 %v416_v32  ;;  %529 = vmatpush.msra.mxu1 %v480_v33  ;;  %v422_v29 = vld [vmem:[#allocation8 + $0x170] sm:$0xff]  ;;  %v423_v31 = vld [vmem:[#allocation8 + $0x178] sm:$0xff] }
  0x64   :  { %549 = vmatpush.msra.mxu2 %v417_v34  ;;  %569 = vmatpush.msra.mxu3 %v481_v35  ;;  %v486_v30 = vld [vmem:[#allocation8 + $0x370] sm:$0xff]  ;;  %v487_v32 = vld [vmem:[#allocation8 + $0x378] sm:$0xff] }
  0x65   :  { %510 = vmatpush.msra.mxu0 %v412_v36  ;;  %530 = vmatpush.msra.mxu1 %v476_v37  ;;  %v418_v33 = vld [vmem:[#allocation8 + $0x150] sm:$0xff]  ;;  %v419_v35 = vld [vmem:[#allocation8 + $0x158] sm:$0xff] }
  0x66   :  { %550 = vmatpush.msra.mxu2 %v413_v38  ;;  %570 = vmatpush.msra.mxu3 %v477_v39  ;;  %v482_v34 = vld [vmem:[#allocation8 + $0x350] sm:$0xff]  ;;  %v483_v36 = vld [vmem:[#allocation8 + $0x358] sm:$0xff] }
  0x67   :  { %511 = vmatpush.msra.mxu0 %v408_v40  ;;  %531 = vmatpush.msra.mxu1 %v472_v41  ;;  %v414_v37 = vld [vmem:[#allocation8 + $0x130] sm:$0xff]  ;;  %v415_v39 = vld [vmem:[#allocation8 + $0x138] sm:$0xff] }
  0x68   :  { %551 = vmatpush.msra.mxu2 %v409_v42  ;;  %571 = vmatpush.msra.mxu3 %v473_v43  ;;  %v478_v38 = vld [vmem:[#allocation8 + $0x330] sm:$0xff]  ;;  %v479_v40 = vld [vmem:[#allocation8 + $0x338] sm:$0xff] }
  0x69   :  { %512 = vmatpush.msra.mxu0 %v404_v44  ;;  %532 = vmatpush.msra.mxu1 %v468_v45  ;;  %v410_v41 = vld [vmem:[#allocation8 + $0x110] sm:$0xff]  ;;  %v411_v43 = vld [vmem:[#allocation8 + $0x118] sm:$0xff] }
  0x6a   :  { %552 = vmatpush.msra.mxu2 %v405_v46  ;;  %572 = vmatpush.msra.mxu3 %v469_v47  ;;  %v474_v42 = vld [vmem:[#allocation8 + $0x310] sm:$0xff]  ;;  %v475_v44 = vld [vmem:[#allocation8 + $0x318] sm:$0xff] }
  0x6b   :  { %513 = vmatpush.msra.mxu0 %v400_v48  ;;  %533 = vmatpush.msra.mxu1 %v464_v49  ;;  %v406_v45 = vld [vmem:[#allocation8 + $0xf0] sm:$0xff]  ;;  %v407_v47 = vld [vmem:[#allocation8 + $0xf8] sm:$0xff] }
  0x6c   :  { %553 = vmatpush.msra.mxu2 %v401_v50  ;;  %573 = vmatpush.msra.mxu3 %v465_v51  ;;  %v470_v46 = vld [vmem:[#allocation8 + $0x2f0] sm:$0xff]  ;;  %v471_v48 = vld [vmem:[#allocation8 + $0x2f8] sm:$0xff] }
  0x6d   :  { %514 = vmatpush.msra.mxu0 %v396_v52  ;;  %534 = vmatpush.msra.mxu1 %v460_v53  ;;  %v402_v49 = vld [vmem:[#allocation8 + $0xd0] sm:$0xff]  ;;  %v403_v51 = vld [vmem:[#allocation8 + $0xd8] sm:$0xff] }
  0x6e   :  { %554 = vmatpush.msra.mxu2 %v397_v54  ;;  %574 = vmatpush.msra.mxu3 %v461_v55  ;;  %v466_v50 = vld [vmem:[#allocation8 + $0x2d0] sm:$0xff]  ;;  %v467_v52 = vld [vmem:[#allocation8 + $0x2d8] sm:$0xff] }
  0x6f   :  { %515 = vmatpush.msra.mxu0 %v392_v56  ;;  %535 = vmatpush.msra.mxu1 %v456_v57  ;;  %v398_v53 = vld [vmem:[#allocation8 + $0xb0] sm:$0xff]  ;;  %v399_v55 = vld [vmem:[#allocation8 + $0xb8] sm:$0xff] }
  0x70   :  { %555 = vmatpush.msra.mxu2 %v393_v58  ;;  %575 = vmatpush.msra.mxu3 %v457_v59  ;;  %v462_v54 = vld [vmem:[#allocation8 + $0x2b0] sm:$0xff]  ;;  %v463_v56 = vld [vmem:[#allocation8 + $0x2b8] sm:$0xff] }
  0x71   :  { %516 = vmatpush.msra.mxu0 %v388_v60  ;;  %536 = vmatpush.msra.mxu1 %v452_v61  ;;  %v394_v57 = vld [vmem:[#allocation8 + $0x90] sm:$0xff]  ;;  %v395_v59 = vld [vmem:[#allocation8 + $0x98] sm:$0xff] }
  0x72   :  { %556 = vmatpush.msra.mxu2 %v389_v62  ;;  %576 = vmatpush.msra.mxu3 %v453_v63  ;;  %v458_v58 = vld [vmem:[#allocation8 + $0x290] sm:$0xff]  ;;  %v459_v60 = vld [vmem:[#allocation8 + $0x298] sm:$0xff] }
  0x73   :  { %517 = vmatpush.msra.mxu0 %v384_v0  ;;  %537 = vmatpush.msra.mxu1 %v448_v1  ;;  %v390_v61 = vld [vmem:[#allocation8 + $0x70] sm:$0xff]  ;;  %v391_v63 = vld [vmem:[#allocation8 + $0x78] sm:$0xff] }
  0x74   :  { %557 = vmatpush.msra.mxu2 %v385_v2  ;;  %577 = vmatpush.msra.mxu3 %v449_v3  ;;  %v454_v62 = vld [vmem:[#allocation8 + $0x270] sm:$0xff]  ;;  %v455_v0 = vld [vmem:[#allocation8 + $0x278] sm:$0xff] }
  0x75   :  { %518 = vmatpush.msra.mxu0 %v380_v4  ;;  %538 = vmatpush.msra.mxu1 %v444_v5  ;;  %v386_v1 = vld [vmem:[#allocation8 + $0x50] sm:$0xff]  ;;  %v387_v3 = vld [vmem:[#allocation8 + $0x58] sm:$0xff] }
  0x76   :  { %558 = vmatpush.msra.mxu2 %v381_v6  ;;  %578 = vmatpush.msra.mxu3 %v445_v7  ;;  %v450_v2 = vld [vmem:[#allocation8 + $0x250] sm:$0xff]  ;;  %v451_v4 = vld [vmem:[#allocation8 + $0x258] sm:$0xff] }
  0x77   :  { %519 = vmatpush.msra.mxu0 %v376_v8  ;;  %539 = vmatpush.msra.mxu1 %v440_v9  ;;  %v382_v5 = vld [vmem:[#allocation8 + $0x30] sm:$0xff]  ;;  %v383_v7 = vld [vmem:[#allocation8 + $0x38] sm:$0xff] }
  0x78   :  { %559 = vmatpush.msra.mxu2 %v377_v10  ;;  %579 = vmatpush.msra.mxu3 %v441_v11  ;;  %v446_v6 = vld [vmem:[#allocation8 + $0x230] sm:$0xff]  ;;  %v447_v8 = vld [vmem:[#allocation8 + $0x238] sm:$0xff] }
  0x79   :  { %584 = vmatpush.msrb.mxu0 %v438_v12  ;;  %604 = vmatpush.msrb.mxu1 %v502_v13  ;;  %v378_v9 = vld [vmem:[#allocation8 + $0x10] sm:$0xff]  ;;  %v379_v11 = vld [vmem:[#allocation8 + $0x18] sm:$0xff] }
  0x7a   :  { %624 = vmatpush.msrb.mxu2 %v439_v14  ;;  %644 = vmatpush.msrb.mxu3 %v503_v15  ;;  %v442_v10 = vld [vmem:[#allocation8 + $0x210] sm:$0xff]  ;;  %v443_v12 = vld [vmem:[#allocation8 + $0x218] sm:$0xff] }
  0x7b   :  { %585 = vmatpush.msrb.mxu0 %v434_v16  ;;  %605 = vmatpush.msrb.mxu1 %v498_v17 }
  0x7c   :  { %625 = vmatpush.msrb.mxu2 %v435_v18  ;;  %645 = vmatpush.msrb.mxu3 %v499_v19 }
  0x7d   :  { %586 = vmatpush.msrb.mxu0 %v430_v20  ;;  %606 = vmatpush.msrb.mxu1 %v494_v22 }
  0x7e   :  { %626 = vmatpush.msrb.mxu2 %v431_v23  ;;  %646 = vmatpush.msrb.mxu3 %v495_v24  ;;  %v709_v23 = vld [vmem:[#allocation5 + $0xf0] sm:$0xff]  ;;  %v710_v24 = vld [vmem:[#allocation5 + $0xf8] sm:$0xff] }
  0x7f   :  { %587 = vmatpush.msrb.mxu0 %v426_v25  ;;  %607 = vmatpush.msrb.mxu1 %v490_v26  ;;  %v707_v25 = vld [vmem:[#allocation5 + $0xe0] sm:$0xff]  ;;  %v708_v26 = vld [vmem:[#allocation5 + $0xe8] sm:$0xff] }
  0x80   :  { %627 = vmatpush.msrb.mxu2 %v427_v27  ;;  %647 = vmatpush.msrb.mxu3 %v491_v28 }
  0x81   :  { %588 = vmatpush.msrb.mxu0 %v422_v29  ;;  %608 = vmatpush.msrb.mxu1 %v486_v30  ;;  %v705_v29 = vld [vmem:[#allocation5 + $0xd0] sm:$0xff]  ;;  %v706_v30 = vld [vmem:[#allocation5 + $0xd8] sm:$0xff] }
  0x82   :  { %628 = vmatpush.msrb.mxu2 %v423_v31  ;;  %648 = vmatpush.msrb.mxu3 %v487_v32 }
  0x83   :  { %589 = vmatpush.msrb.mxu0 %v418_v33  ;;  %609 = vmatpush.msrb.mxu1 %v482_v34  ;;  %v741_v34 = vld [vmem:[#allocation5 + $0x1f0] sm:$0xff] }
  0x84   :  { %629 = vmatpush.msrb.mxu2 %v419_v35  ;;  %649 = vmatpush.msrb.mxu3 %v483_v36  ;;  %v742_v35 = vld [vmem:[#allocation5 + $0x1f8] sm:$0xff]  ;;  %v739_v36 = vld [vmem:[#allocation5 + $0x1e0] sm:$0xff] }
  0x85   :  { %590 = vmatpush.msrb.mxu0 %v414_v37  ;;  %610 = vmatpush.msrb.mxu1 %v478_v38  ;;  %v740_v37 = vld [vmem:[#allocation5 + $0x1e8] sm:$0xff]  ;;  %v703_v38 = vld [vmem:[#allocation5 + $0xc0] sm:$0xff] }
  0x86   :  { %630 = vmatpush.msrb.mxu2 %v415_v39  ;;  %650 = vmatpush.msrb.mxu3 %v479_v40  ;;  %v704_v39 = vld [vmem:[#allocation5 + $0xc8] sm:$0xff]  ;;  %v737_v40 = vld [vmem:[#allocation5 + $0x1d0] sm:$0xff] }
  0x87   :  { %591 = vmatpush.msrb.mxu0 %v410_v41  ;;  %611 = vmatpush.msrb.mxu1 %v474_v42  ;;  %v738_v41 = vld [vmem:[#allocation5 + $0x1d8] sm:$0xff]  ;;  %v701_v42 = vld [vmem:[#allocation5 + $0xb0] sm:$0xff] }
  0x88   :  { %631 = vmatpush.msrb.mxu2 %v411_v43  ;;  %651 = vmatpush.msrb.mxu3 %v475_v44  ;;  %v702_v43 = vld [vmem:[#allocation5 + $0xb8] sm:$0xff]  ;;  %v735_v44 = vld [vmem:[#allocation5 + $0x1c0] sm:$0xff] }
  0x89   :  { %592 = vmatpush.msrb.mxu0 %v406_v45  ;;  %612 = vmatpush.msrb.mxu1 %v470_v46  ;;  %v736_v45 = vld [vmem:[#allocation5 + $0x1c8] sm:$0xff]  ;;  %v733_v46 = vld [vmem:[#allocation5 + $0x1b0] sm:$0xff] }
  0x8a   :  { %632 = vmatpush.msrb.mxu2 %v407_v47  ;;  %652 = vmatpush.msrb.mxu3 %v471_v48  ;;  %v734_v47 = vld [vmem:[#allocation5 + $0x1b8] sm:$0xff]  ;;  %v699_v48 = vld [vmem:[#allocation5 + $0xa0] sm:$0xff] }
  0x8b   :  { %593 = vmatpush.msrb.mxu0 %v402_v49  ;;  %613 = vmatpush.msrb.mxu1 %v466_v50  ;;  %v700_v49 = vld [vmem:[#allocation5 + $0xa8] sm:$0xff]  ;;  %v731_v50 = vld [vmem:[#allocation5 + $0x1a0] sm:$0xff] }
  0x8c   :  { %633 = vmatpush.msrb.mxu2 %v403_v51  ;;  %653 = vmatpush.msrb.mxu3 %v467_v52  ;;  %v732_v51 = vld [vmem:[#allocation5 + $0x1a8] sm:$0xff]  ;;  %v697_v52 = vld [vmem:[#allocation5 + $0x90] sm:$0xff] }
  0x8d   :  { %594 = vmatpush.msrb.mxu0 %v398_v53  ;;  %614 = vmatpush.msrb.mxu1 %v462_v54  ;;  %v698_v53 = vld [vmem:[#allocation5 + $0x98] sm:$0xff]  ;;  %v729_v54 = vld [vmem:[#allocation5 + $0x190] sm:$0xff] }
  0x8e   :  { %634 = vmatpush.msrb.mxu2 %v399_v55  ;;  %654 = vmatpush.msrb.mxu3 %v463_v56  ;;  %v730_v55 = vld [vmem:[#allocation5 + $0x198] sm:$0xff]  ;;  %v695_v56 = vld [vmem:[#allocation5 + $0x80] sm:$0xff] }
  0x8f   :  { %595 = vmatpush.msrb.mxu0 %v394_v57  ;;  %615 = vmatpush.msrb.mxu1 %v458_v58  ;;  %v696_v57 = vld [vmem:[#allocation5 + $0x88] sm:$0xff]  ;;  %v727_v58 = vld [vmem:[#allocation5 + $0x180] sm:$0xff] }
  0x90   :  { %635 = vmatpush.msrb.mxu2 %v395_v59  ;;  %655 = vmatpush.msrb.mxu3 %v459_v60  ;;  %v728_v59 = vld [vmem:[#allocation5 + $0x188] sm:$0xff]  ;;  %v693_v60 = vld [vmem:[#allocation5 + $0x70] sm:$0xff] }
  0x91   :  { %596 = vmatpush.msrb.mxu0 %v390_v61  ;;  %616 = vmatpush.msrb.mxu1 %v454_v62  ;;  %v694_v61 = vld [vmem:[#allocation5 + $0x78] sm:$0xff]  ;;  %v725_v62 = vld [vmem:[#allocation5 + $0x170] sm:$0xff] }
  0x92   :  { %636 = vmatpush.msrb.mxu2 %v391_v63  ;;  %656 = vmatpush.msrb.mxu3 %v455_v0  ;;  %v726_v63 = vld [vmem:[#allocation5 + $0x178] sm:$0xff]  ;;  %v691_v0 = vld [vmem:[#allocation5 + $0x60] sm:$0xff] }
  0x93   :  { %597 = vmatpush.msrb.mxu0 %v386_v1  ;;  %617 = vmatpush.msrb.mxu1 %v450_v2  ;;  %v692_v1 = vld [vmem:[#allocation5 + $0x68] sm:$0xff]  ;;  %v723_v2 = vld [vmem:[#allocation5 + $0x160] sm:$0xff] }
  0x94   :  { %637 = vmatpush.msrb.mxu2 %v387_v3  ;;  %657 = vmatpush.msrb.mxu3 %v451_v4  ;;  %v724_v3 = vld [vmem:[#allocation5 + $0x168] sm:$0xff]  ;;  %v689_v4 = vld [vmem:[#allocation5 + $0x50] sm:$0xff] }
  0x95   :  { %598 = vmatpush.msrb.mxu0 %v382_v5  ;;  %618 = vmatpush.msrb.mxu1 %v446_v6  ;;  %v690_v5 = vld [vmem:[#allocation5 + $0x58] sm:$0xff]  ;;  %v721_v6 = vld [vmem:[#allocation5 + $0x150] sm:$0xff] }
  0x96   :  { %638 = vmatpush.msrb.mxu2 %v383_v7  ;;  %658 = vmatpush.msrb.mxu3 %v447_v8  ;;  %v722_v7 = vld [vmem:[#allocation5 + $0x158] sm:$0xff]  ;;  %v687_v8 = vld [vmem:[#allocation5 + $0x40] sm:$0xff] }
  0x97   :  { %599 = vmatpush.msrb.mxu0 %v378_v9  ;;  %619 = vmatpush.msrb.mxu1 %v442_v10  ;;  %v688_v9 = vld [vmem:[#allocation5 + $0x48] sm:$0xff]  ;;  %v719_v10 = vld [vmem:[#allocation5 + $0x140] sm:$0xff] }
  0x98   :  { %639 = vmatpush.msrb.mxu2 %v379_v11  ;;  %659 = vmatpush.msrb.mxu3 %v443_v12  ;;  %v720_v11 = vld [vmem:[#allocation5 + $0x148] sm:$0xff]  ;;  %v685_v12 = vld [vmem:[#allocation5 + $0x30] sm:$0xff] }
  0xca   :  { %v231_v13 = vpop.f32.mrf.mxu0  ;;  %v251_v14 = vpop.f32.mrf.mxu1 }
  0xcb   :  { %v252_v19 = vadd.f32 %v251_v14, %v231_v13  ;;  %v686_v13 = vld [vmem:[#allocation5 + $0x38] sm:$0xff]  ;;  %v717_v14 = vld [vmem:[#allocation5 + $0x130] sm:$0xff] }
  0xd1   :  { %v271_v15 = vpop.f32.mrf.mxu2  ;;  %v291_v16 = vpop.f32.mrf.mxu3 }
  0xd2   :  { %v292_v31 = vadd.f32 %v291_v16, %v271_v15  ;;  %v718_v15 = vld [vmem:[#allocation5 + $0x138] sm:$0xff]  ;;  %v683_v16 = vld [vmem:[#allocation5 + $0x20] sm:$0xff] }
  0xd4   :  { %v311_v17 = vpop.f32.mrf.mxu0  ;;  %v331_v18 = vpop.f32.mrf.mxu1 }
  0xd5   :  { %v332_v20 = vadd.f32 %v331_v18, %v311_v17  ;;  %v684_v17 = vld [vmem:[#allocation5 + $0x28] sm:$0xff]  ;;  %v715_v18 = vld [vmem:[#allocation5 + $0x120] sm:$0xff] }
  0xd7   :  { %v374_v22 = vmax.f32 %v252_v19, %v332_v20  ;;  %v716_v19 = vld [vmem:[#allocation5 + $0x128] sm:$0xff]  ;;  %v681_v20 = vld [vmem:[#allocation5 + $0x10] sm:$0xff] }
  0xd9   :  { %520 = vmatmul.f32.vlgmr.msra.gmra.mxu0 %v374_v22  ;;  %560 = vmatmul.f32.vlgmr.msra.gmra.mxu2 %v374_v22 }
  0xda   :  { %749 = vmatpush.msra.mxu0 %v709_v23  ;;  %789 = vmatpush.msra.mxu2 %v710_v24  ;;  %v713_v23 = vld [vmem:[#allocation5 + $0x110] sm:$0xff]  ;;  %v714_v24 = vld [vmem:[#allocation5 + $0x118] sm:$0xff] }
  0xdb   :  { %v351_v27 = vpop.f32.mrf.mxu2  ;;  %v371_v28 = vpop.f32.mrf.mxu3 }
  0xdc   :  { %v372_v32 = vadd.f32 %v371_v28, %v351_v27  ;;  %750 = vmatpush.msra.mxu0 %v707_v25  ;;  %790 = vmatpush.msra.mxu2 %v708_v26  ;;  %v679_v25 = vld [vmem:[#allocation5] sm:$0xff]  ;;  %v680_v26 = vld [vmem:[#allocation5 + $0x8] sm:$0xff] }
  0xdd   :  { %v711_v27 = vld [vmem:[#allocation5 + $0x100] sm:$0xff]  ;;  %v712_v28 = vld [vmem:[#allocation5 + $0x108] sm:$0xff] }
  0xde   :  { %v375_v33 = vmax.f32 %v292_v31, %v372_v32  ;;  %751 = vmatpush.msra.mxu0 %v705_v29  ;;  %791 = vmatpush.msra.mxu2 %v706_v30  ;;  %v745_v29 = vld.sshfl [vmem:[#allocation1] sm:$0xff pattern:$0x73625140]  ;;  %v746_v30 = vld.sshfl [vmem:[#allocation1 + $0x8] sm:$0xff pattern:$0x73625140] }
  0xe0   :  { %540 = vmatmul.f32.vlgmr.msra.gmra.mxu1 %v375_v33  ;;  %580 = vmatmul.f32.vlgmr.msra.gmra.mxu3 %v375_v33 }
  0xe1   :  { %769 = vmatpush.msra.mxu1 %v741_v34  ;;  %809 = vmatpush.msra.mxu3 %v742_v35 }
  0xe2   :  { %600 = vmatmul.f32.vlgmr.msrb.gmra.mxu0 %v374_v22  ;;  %640 = vmatmul.f32.vlgmr.msrb.gmra.mxu2 %v374_v22  ;;  %v682_v22 = vld [vmem:[#allocation5 + $0x18] sm:$0xff] }
  0xe3   :  { %770 = vmatpush.msra.mxu1 %v739_v36  ;;  %810 = vmatpush.msra.mxu3 %v740_v37 }
  0xe4   :  { %752 = vmatpush.msra.mxu0 %v703_v38  ;;  %792 = vmatpush.msra.mxu2 %v704_v39 }
  0xe5   :  { %771 = vmatpush.msra.mxu1 %v737_v40  ;;  %811 = vmatpush.msra.mxu3 %v738_v41 }
  0xe6   :  { %753 = vmatpush.msra.mxu0 %v701_v42  ;;  %793 = vmatpush.msra.mxu2 %v702_v43 }
  0xe7   :  { %772 = vmatpush.msra.mxu1 %v735_v44  ;;  %812 = vmatpush.msra.mxu3 %v736_v45 }
  0xe8   :  { %620 = vmatmul.f32.vlgmr.msrb.gmra.mxu1 %v375_v33  ;;  %660 = vmatmul.f32.vlgmr.msrb.gmra.mxu3 %v375_v33 }
  0xe9   :  { %773 = vmatpush.msra.mxu1 %v733_v46  ;;  %813 = vmatpush.msra.mxu3 %v734_v47 }
  0xea   :  { %754 = vmatpush.msra.mxu0 %v699_v48  ;;  %794 = vmatpush.msra.mxu2 %v700_v49 }
  0xeb   :  { %774 = vmatpush.msra.mxu1 %v731_v50  ;;  %814 = vmatpush.msra.mxu3 %v732_v51 }
  0xec   :  { %755 = vmatpush.msra.mxu0 %v697_v52  ;;  %795 = vmatpush.msra.mxu2 %v698_v53 }
  0xed   :  { %775 = vmatpush.msra.mxu1 %v729_v54  ;;  %815 = vmatpush.msra.mxu3 %v730_v55 }
  0xee   :  { %756 = vmatpush.msra.mxu0 %v695_v56  ;;  %796 = vmatpush.msra.mxu2 %v696_v57 }
  0xef   :  { %776 = vmatpush.msra.mxu1 %v727_v58  ;;  %816 = vmatpush.msra.mxu3 %v728_v59 }
  0xf0   :  { %757 = vmatpush.msra.mxu0 %v693_v60  ;;  %797 = vmatpush.msra.mxu2 %v694_v61 }
  0xf1   :  { %777 = vmatpush.msra.mxu1 %v725_v62  ;;  %817 = vmatpush.msra.mxu3 %v726_v63 }
  0xf2   :  { %758 = vmatpush.msra.mxu0 %v691_v0  ;;  %798 = vmatpush.msra.mxu2 %v692_v1 }
  0xf3   :  { %778 = vmatpush.msra.mxu1 %v723_v2  ;;  %818 = vmatpush.msra.mxu3 %v724_v3 }
  0xf4   :  { %759 = vmatpush.msra.mxu0 %v689_v4  ;;  %799 = vmatpush.msra.mxu2 %v690_v5 }
  0xf5   :  { %779 = vmatpush.msra.mxu1 %v721_v6  ;;  %819 = vmatpush.msra.mxu3 %v722_v7 }
  0xf6   :  { %760 = vmatpush.msra.mxu0 %v687_v8  ;;  %800 = vmatpush.msra.mxu2 %v688_v9 }
  0xf7   :  { %780 = vmatpush.msra.mxu1 %v719_v10  ;;  %820 = vmatpush.msra.mxu3 %v720_v11 }
  0xf8   :  { %761 = vmatpush.msra.mxu0 %v685_v12  ;;  %801 = vmatpush.msra.mxu2 %v686_v13 }
  0xf9   :  { %781 = vmatpush.msra.mxu1 %v717_v14  ;;  %821 = vmatpush.msra.mxu3 %v718_v15 }
  0xfa   :  { %762 = vmatpush.msra.mxu0 %v683_v16  ;;  %802 = vmatpush.msra.mxu2 %v684_v17 }
  0xfb   :  { %782 = vmatpush.msra.mxu1 %v715_v18  ;;  %822 = vmatpush.msra.mxu3 %v716_v19 }
  0xfc   :  { %763 = vmatpush.msra.mxu0 %v681_v20  ;;  %803 = vmatpush.msra.mxu2 %v682_v22 }
  0xfd   :  { %783 = vmatpush.msra.mxu1 %v713_v23  ;;  %823 = vmatpush.msra.mxu3 %v714_v24 }
  0xfe   :  { %764 = vmatpush.msra.mxu0 %v679_v25  ;;  %804 = vmatpush.msra.mxu2 %v680_v26 }
  0xff   :  { %784 = vmatpush.msra.mxu1 %v711_v27  ;;  %824 = vmatpush.msra.mxu3 %v712_v28 }
 0x100   :  { %765 = vmatmul.f32.vlgmr.msra.gmra.mxu0 %v745_v29  ;;  %785 = vmatmul.f32.vlgmr.msra.gmra.mxu1 %v746_v30 }
 0x101   :  { %805 = vmatmul.f32.vlgmr.msra.gmra.mxu2 %v745_v29  ;;  %825 = vmatmul.f32.vlgmr.msra.gmra.mxu3 %v746_v30 }
 0x156   :  { %v521_v31 = vpop.f32.mrf.mxu0 }
 0x15c   :  { %v561_v33 = vpop.f32.mrf.mxu2 }
 0x15d   :  { %v541_v32 = vpop.f32.mrf.mxu1 }
 0x15e   :  { %v542_v50 = vadd.f32 %v541_v32, %v521_v31 }
 0x15f   :  { %v601_v35 = vpop.f32.mrf.mxu0 }
 0x163   :  { %v581_v34 = vpop.f32.mrf.mxu3 }
 0x164   :  { %v582_v47 = vadd.f32 %v581_v34, %v561_v33 }
 0x165   :  { %v621_v36 = vpop.f32.mrf.mxu1  ;;  %v641_v37 = vpop.f32.mrf.mxu2 }
 0x166   :  { %v622_v48 = vadd.f32 %v621_v36, %v601_v35 }
 0x168   :  { %v664_v54 = vmax.f32 %v542_v50, %v622_v48 }
 0x16b   :  { %v661_v38 = vpop.f32.mrf.mxu3 }
 0x16c   :  { %v662_v45 = vadd.f32 %v661_v38, %v641_v37 }
 0x16e   :  { %v665_v51 = vmax.f32 %v582_v47, %v662_v45 }
 0x17d   :  { %v766_v39 = vpop.f32.mrf.mxu0  ;;  %v786_v40 = vpop.f32.mrf.mxu1 }
 0x17e   :  { %v787_v41 = vadd.f32 %v786_v40, %v766_v39 }
 0x180   :  { %vm829_vm3 = vcmp.eq.f32.partialorder %v787_v41, 32.0  ;;  %vm831_vm4 = vcmp.eq.f32.partialorder %v787_v41, 2048.0  ;;  %vm835_vm6 = vcmp.eq.f32.partialorder %v787_v41, 131072.0 }
 0x181   :  { %vm833_vm5 = vmor %vm829_vm3, %vm831_vm4 }
 0x182   :  { %vm837_vm7 = vmor %vm833_vm5, %vm835_vm6 }
 0x183   :  { %v876_v46 = vsel %vm837_vm7, 1.0, %v1024_v21 }
 0x184   :  { %v806_v42 = vpop.f32.mrf.mxu2  ;;  %v826_v43 = vpop.f32.mrf.mxu3  ;;  %v843_v52 = vsub.f32 1.0, %v876_v46 }
 0x185   :  { %v827_v44 = vadd.f32 %v826_v43, %v806_v42 }
 0x186   :  { %v845_v56 = vmul.f32 %v843_v52, %v664_v54 }
 0x187   :  { %vm830_vm8 = vcmp.eq.f32.partialorder %v827_v44, 32.0  ;;  %vm832_vm9 = vcmp.eq.f32.partialorder %v827_v44, 2048.0  ;;  %vm836_vm10 = vcmp.eq.f32.partialorder %v827_v44, 131072.0 }
 0x188   :  { %vm834_vm11 = vmor %vm830_vm8, %vm832_vm9 }
 0x189   :  { %vm838_vm12 = vmor %vm834_vm11, %vm836_vm10 }
 0x18a   :  { %v877_v49 = vsel %vm838_vm12, 1.0, %v1024_v21 }
 0x18b   :  { %v844_v53 = vsub.f32 1.0, %v877_v49 }
 0x18d   :  { %v846_v55 = vmul.f32 %v844_v53, %v665_v51 }
 0x18f   :  { %v849_v57 = vrot.slane %v846_v55, 6 }
 0x191   :  { %v851_v58 = vsel %vm850_vm13, %v845_v56, %v849_v57 }
 0x192   :  { %853 = vst [vmem:[#allocation10] sm:$0xf] %v851_v58 }
 0x193   :  { %864 = dma.vmem_to_hbm [thread:$0]  %s860_s3, 64, %s862_s13, [#allocation4]  }
 0x194   :  { %1014 = dma.done.wait [#allocation4], 64  }
 0x195   :  { %1015 = vsyncadd [#allocation4], 4294967232 }
 0x196   :  { %869 = vsyncpa [#allocation3], 1 }
 0x197   :  { %870 = vsyncpa [#allocation6], 1 }
 0x198   :  { %871 = vsyncpa [#allocation9], 1 }
 0x199   :  { %872 = vsyncpa [#allocation4], 1 }

</bundles_post_ra>
